<compile_context>
chip_gen: v6e
topology: v6e:2x2x1
jax: 0.10.0
libtpu: 0.0.40
codegen_flags: <defaults>
</compile_context>

<pallas_src>
import jax
import jax.numpy as jnp
from jax.experimental import pallas as pl
from jax.experimental.pallas import tpu as pltpu


_CHUNK_ROWS = 8            # output rows finalized per inner step (one sublane group)
_TARGET_WINDOW = 32        # target number of in-flight row DMAs
_VMEM_CAP = 48 * 2**20     # stay well under v7x's 64 MiB physical VMEM


# ----------------------------------------------------------------------------
# Parameter / constant construction (plain JAX glue)
# ----------------------------------------------------------------------------
def positional_encoding(max_seq_len: int, dim: int, n: int = 10000) -> jnp.ndarray:
    """Standard sinusoidal positional encoding, shape (max_seq_len, dim), f32."""
    pos = jnp.arange(max_seq_len, dtype=jnp.float32)[:, None]          # (L, 1)
    i = jnp.arange(dim // 2, dtype=jnp.float32)[None, :]               # (1, D/2)
    denom = jnp.power(jnp.float32(n), 2.0 * i / jnp.float32(dim))      # (1, D/2)
    angles = pos / denom                                               # (L, D/2)
    pe = jnp.zeros((max_seq_len, dim), jnp.float32)
    pe = pe.at[:, 0::2].set(jnp.sin(angles))
    pe = pe.at[:, 1::2].set(jnp.cos(angles))
    return pe


# ----------------------------------------------------------------------------
# Kernel 1: small vocab -- integer one-hot + MXU gather, lane-dense output
# ----------------------------------------------------------------------------
def _embed_onehot_kernel(ids_ref, table_ref, pe_ref, out_ref):
    """Gather-by-one-hot matmul with G tokens packed per 128-lane output row.

    ids_ref:   (R, G)    int32  token ids, G per output row
    table_ref: (V, D)    f32    embedding table (single copy, no kron blow-up)
    pe_ref:    (1, D)    f32    pe[batch_size] row
    out_ref:   (R, G*D)  f32    lane-dense output block
    """
    r, g = ids_ref.shape
    v, d = table_ref.shape

    ids = ids_ref[...]                                           # (R, G) int32
    vocab = jax.lax.broadcasted_iota(jnp.int32, (r, v), 1)       # (R, V) int32
    table = table_ref[...]
    pe = pe_ref[...]

    pieces = []
    for grp in range(g):
        ids_g = ids[:, grp:grp + 1]                              # (R, 1) int32
        # Integer compare -> exact one-hot (no float rounding hazard).
        onehot = (ids_g == vocab).astype(jnp.float32)            # (R, V)
        # HIGHEST precision keeps the f32 table exact through the MXU.
        rows = jnp.dot(onehot, table,
                       preferred_element_type=jnp.float32,
                       precision=jax.lax.Precision.HIGHEST)      # (R, D)
        pieces.append(rows + pe)
    out_ref[...] = pieces[0] if g == 1 else jnp.concatenate(pieces, axis=-1)


# ----------------------------------------------------------------------------
# Kernel 2: large vocab -- HBM table + scalar-prefetch DMA row gather
# ----------------------------------------------------------------------------
def _make_gather_kernel(g: int, k_window: int):
    """Build the gather kernel for G tokens/row and a window of K chunks."""

    def kernel(ids_ref, table_ref, pe_ref, out_ref, sem):
        # ids_ref:   (n_total,)        int32 in SMEM (scalar-prefetched ids)
        # table_ref: (V, D)            f32 in HBM (memory_space=pl.ANY)
        # pe_ref:    (1, G*D)          f32 in VMEM
        # out_ref:   (rows_tile, G*D)  f32 VMEM output block (lane-dense)
        # sem:       (K, 8*G)          DMA semaphores
        rows, _ = out_ref.shape
        _, d = table_ref.shape
        chunk_tok = _CHUNK_ROWS * g          # tokens per finalized 8-row chunk
        n_chunks = rows // _CHUNK_ROWS
        tokens = rows * g                    # tokens handled by this grid step
        base = pl.program_id(0) * tokens
        last_id = pl.num_programs(0) * tokens - 1

        def dst(cc, j):
            row = cc * _CHUNK_ROWS + j // g
            if g == 1:
                return out_ref.at[pl.ds(row, 1)]
            return out_ref.at[pl.ds(row, 1), pl.ds((j % g) * d, d)]

        def issue(cc, j, tok):
            pltpu.make_async_copy(table_ref.at[pl.ds(tok, 1)], dst(cc, j),
                                  sem.at[cc % k_window, j]).start()

        def wait(cc, j):
            # Invariant: the source slice here only fixes the transfer shape /
            # byte count; the actual source row was chosen by the matching
            # .start() above (same (1, D) shape, same semaphore slot).
            pltpu.make_async_copy(table_ref.at[pl.ds(0, 1)], dst(cc, j),
                                  sem.at[cc % k_window, j]).wait()

        # Prime the DMA window (all SMEM reads / issues happen before any wait).
        for t in range(min(k_window * chunk_tok, tokens)):
            issue(t // chunk_tok, t % chunk_tok, ids_ref[base + t])

        @pl.loop(0, n_chunks)
        def _(c):
            # 1) SMEM id reads for the chunk we are about to prefetch, hoisted
            #    above the waits (a .wait() breaks SMEM sst->sld forwarding).
            nxt = []
            if k_window < n_chunks:
                for j in range(chunk_tok):
                    idx = base + (c + k_window) * chunk_tok + j
                    nxt.append(ids_ref[jnp.minimum(idx, last_id)])

            # 2) Wait for this chunk's rows (they land directly in out_ref).
            for j in range(chunk_tok):
                wait(c, j)

            # 3) Refill the window (slots just freed by the waits above).
            if k_window < n_chunks:
                @pl.when(c + k_window < n_chunks)
                def _():
                    for j in range(chunk_tok):
                        issue(c + k_window, j, nxt[j])

            # 4) Add the PE row to this 8-row chunk; overlaps in-flight DMAs.
            r0 = pl.multiple_of(c * _CHUNK_ROWS, _CHUNK_ROWS)
            out_ref[pl.ds(r0, _CHUNK_ROWS), :] = (
                out_ref[pl.ds(r0, _CHUNK_ROWS), :] + pe_ref[...])

    return kernel


# ----------------------------------------------------------------------------
# Wrapper helpers
# ----------------------------------------------------------------------------
def _pick_group(d: int) -> int:
    """How many tokens to pack per 128-lane output row (lane-dense stores)."""
    if d % 128 == 0:
        return 1                     # already lane-dense
    if 128 % d == 0:
        return 128 // d              # pack G tokens per vreg row
    return 1                         # odd dims: fall back to masked stores


def _choose_tiling(n_tok: int, unit: int, target_tokens: int):
    """Pick (tile, n_total): tile % unit == 0 and n_total % tile == 0.

    Prefers a tile that divides n_tok exactly (no padding -> the final
    [:n_tok] slice stays a free bitcast) and keeps >= 2 grid steps when there
    is more than one unit of work (v7x megacore)."""
    n_units_pad = -(-n_tok // unit)
    target_units = max(1, target_tokens // unit)
    if n_units_pad >= 2:
        target_units = min(target_units, -(-n_units_pad // 2))
    tile_units = max(1, min(target_units, n_units_pad))
    pad_tiles = -(-n_units_pad // tile_units)
    best_units, best_tiles = tile_units, pad_tiles
    if n_tok > 0 and n_tok % unit == 0:
        n_units = n_tok // unit
        div, d = 1, 1
        while d * d <= n_units:
            if n_units % d == 0:
                for c in (d, n_units // d):
                    if c <= target_units:
                        div = max(div, c)
            d += 1
        exact_tiles = n_units // div
        if exact_tiles <= 2 * pad_tiles:     # pad-free tiling without grid blow-up
            best_units, best_tiles = div, exact_tiles
    tile = best_units * unit
    return tile, best_tiles * tile


# ----------------------------------------------------------------------------
# Wrapper
# ----------------------------------------------------------------------------
def embedding_forward(ids: jnp.ndarray,
                      embed_table: jnp.ndarray,
                      pe: jnp.ndarray,
                      *,
                      token_tile: int | None = None,
                      onehot_max_vocab: int = 256) -> jnp.ndarray:
    """Forward pass of the `Embedding` module (eval mode)."""
    B, S = ids.shape
    V, D = embed_table.shape

    # pe[x.shape[0]] == pe[B]  (faithful to the module's quirk).  dynamic_slice
    # clamps silently if B >= max_seq_len where PyTorch indexing would raise.
    pe_row = jax.lax.dynamic_slice(pe.astype(jnp.float32), (B, 0), (1, D))

    # nn.Embedding would raise on out-of-range ids; clamp so the gather stays
    # in bounds.
    flat_ids = jnp.clip(ids.reshape(-1), 0, V - 1).astype(jnp.int32)
    n_tok = flat_ids.shape[0]

    G = _pick_group(D)
    W = G * D
    unit = _CHUNK_ROWS * G
    use_onehot = V <= onehot_max_vocab
    if token_tile is None:
        token_tile = 512 if use_onehot else 2048

    tile, n_total = _choose_tiling(n_tok, unit, token_tile)
    n_tiles = n_total // tile
    rows_tile = tile // G
    n_rows = n_total // G

    if n_total != n_tok:
        flat_ids = jnp.pad(flat_ids, (0, n_total - n_tok))   # pad gathers row 0
    table_f32 = embed_table.astype(jnp.float32)

    if use_onehot:
        # Small vocab: single VMEM-resident table + integer one-hot MXU gather.
        ids2d = flat_ids.reshape(n_rows, G)
        est = (2 * V * D * 4 + 2 * rows_tile * G * 4
               + 2 * rows_tile * W * 4 + 2 * rows_tile * V * 4 + (2 << 20))
        out2d = pl.pallas_call(
            _embed_onehot_kernel,
            out_shape=jax.ShapeDtypeStruct((n_rows, W), jnp.float32),
            grid=(n_tiles,),
            in_specs=[
                pl.BlockSpec((rows_tile, G), lambda i: (i, 0)),   # packed ids
                pl.BlockSpec((V, D), lambda i: (0, 0)),           # full table
                pl.BlockSpec((1, D), lambda i: (0, 0)),           # pe[B] row
            ],
            out_specs=pl.BlockSpec((rows_tile, W), lambda i: (i, 0)),
            compiler_params=pltpu.CompilerParams(
                dimension_semantics=("parallel",),
                vmem_limit_bytes=int(min(_VMEM_CAP, max(8 << 20, 2 * est))),
            ),
        )(ids2d, table_f32, pe_row)
    else:
        # Large vocab: table stays in HBM; ids scalar-prefetched to SMEM; rows
        # gathered with a rolling window of async DMAs straight into out_ref.
        # TODO(synk): for extremely large B*S the whole-id-array SMEM prefetch
        # could exceed SMEM; switch to per-tile id blocks if that ever happens.
        chunk_tok = unit
        n_chunks = rows_tile // _CHUNK_ROWS
        k_window = max(1, min(_TARGET_WINDOW // chunk_tok, n_chunks))
        pe_big = pe_row if G == 1 else jnp.tile(pe_row, (1, G))
        grid_spec = pltpu.PrefetchScalarGridSpec(
            num_scalar_prefetch=1,
            grid=(n_tiles,),
            in_specs=[
                pl.BlockSpec(memory_space=pl.ANY),                # table in HBM
                pl.BlockSpec((1, W), lambda i, ids_s: (0, 0)),    # pe[B] row
            ],
            out_specs=pl.BlockSpec((rows_tile, W), lambda i, ids_s: (i, 0)),
            scratch_shapes=[pltpu.SemaphoreType.DMA((k_window, chunk_tok))],
        )
        est = 4 * rows_tile * W * 4 + (2 << 20)
        out2d = pl.pallas_call(
            _make_gather_kernel(G, k_window),
            out_shape=jax.ShapeDtypeStruct((n_rows, W), jnp.float32),
            grid_spec=grid_spec,
            compiler_params=pltpu.CompilerParams(
                dimension_semantics=("parallel",),
                vmem_limit_bytes=int(min(_VMEM_CAP, max(8 << 20, 2 * est))),
            ),
        )(flat_ids, table_f32, pe_big)

    # (n_rows, G*D) row-major == (n_total, D) row-major: free reshape outside.
    out = out2d.reshape(n_total, D)
    if n_total != n_tok:
        out = out[:n_tok]
    # TODO(synk): training-mode dropout (p=0.1) is omitted; eval-mode dropout is
    # the identity and PyTorch's RNG could not be matched anyway.
    return out.reshape(B, S, D)


# ----------------------------------------------------------------------------
# Demo / self-check
# ----------------------------------------------------------------------------
def _reference(ids, embed_table, pe):
    return embed_table[ids] + pe[ids.shape[0]][None, None, :]


if __name__ == "__main__":
    key = jax.random.PRNGKey(0)
    k_w1, k_i1, k_w2, k_i2 = jax.random.split(key, 4)

    # --- Small-vocab path (integer one-hot MXU gather), module-sized shapes --
    vocab, dim, max_seq_len = 64, 32, 128
    B, S = 2, 8
    table = jax.random.normal(k_w1, (vocab, dim), dtype=jnp.float32)  # N(0,1) init
    pe = positional_encoding(max_seq_len, dim)
    ids = jax.random.randint(k_i1, (B, S), 0, vocab, dtype=jnp.int32)

    out = jax.block_until_ready(embedding_forward(ids, table, pe))
    ref = _reference(ids, table, pe)
    assert out.shape == (B, S, dim)
    assert jnp.allclose(out, ref, atol=1e-5, rtol=1e-5)

    # --- Large-vocab path (HBM table + scalar-prefetch DMA row gather) -------
    vocab2, dim2, max_seq_len2 = 2048, 128, 128
    B2, S2 = 2, 384
    table2 = jax.random.normal(k_w2, (vocab2, dim2), dtype=jnp.float32)
    pe2 = positional_encoding(max_seq_len2, dim2)
    ids2 = jax.random.randint(k_i2, (B2, S2), 0, vocab2, dtype=jnp.int32)

    out2 = jax.block_until_ready(embedding_forward(ids2, table2, pe2))
    ref2 = _reference(ids2, table2, pe2)
    assert out2.shape == (B2, S2, dim2)
    assert jnp.allclose(out2, ref2, atol=1e-5, rtol=1e-5)

    print("KERNEL_OK")
</pallas_src>

<mosaic_0001>
module attributes {stable_mosaic.version = 11 : i64} {
  func.func @_embed_onehot_kernel(%arg0: i32, %arg1: memref<8x4xi32, #tpu.memory_space<vmem>>, %arg2: memref<64x32xf32, #tpu.memory_space<vmem>>, %arg3: memref<1x32xf32, #tpu.memory_space<vmem>>, %arg4: memref<8x128xf32, #tpu.memory_space<vmem>>) attributes {dimension_semantics = [#tpu.dimension_semantics<parallel>], iteration_bounds = array<i64: 1>, scalar_prefetch = 0 : i64, scratch_operands = 0 : i64, tpu.core_type = #tpu.core_type<tc>, window_params = [{transform_indices = @transform_0, window_bounds = array<i64: 8, 4>}, {pipeline_mode = #tpu.pipeline_mode<synchronous>, transform_indices = @transform_1, window_bounds = array<i64: 64, 32>}, {pipeline_mode = #tpu.pipeline_mode<synchronous>, transform_indices = @transform_2, window_bounds = array<i64: 1, 32>}, {transform_indices = @transform_3, window_bounds = array<i64: 8, 128>}]} {
    %c0 = arith.constant 0 : index
    %c0_0 = arith.constant 0 : index
    %0 = vector.load %arg1[%c0, %c0_0] : memref<8x4xi32, #tpu.memory_space<vmem>>, vector<8x4xi32>
    %1 = tpu.iota {dimensions = array<i32: 1>} : vector<8x64xi32>
    %c0_1 = arith.constant 0 : index
    %c0_2 = arith.constant 0 : index
    %2 = vector.load %arg2[%c0_1, %c0_2] : memref<64x32xf32, #tpu.memory_space<vmem>>, vector<64x32xf32>
    %c0_3 = arith.constant 0 : index
    %c0_4 = arith.constant 0 : index
    %3 = vector.load %arg3[%c0_3, %c0_4] : memref<1x32xf32, #tpu.memory_space<vmem>>, vector<1x32xf32>
    %4 = vector.extract_strided_slice %0 {offsets = [0, 0], sizes = [8, 1], strides = [1, 1]} : vector<8x4xi32> to vector<8x1xi32>
    %5 = vector.broadcast %4 : vector<8x1xi32> to vector<8x64xi32>
    %6 = arith.cmpi eq, %5, %1 : vector<8x64xi32>
    %7 = arith.extui %6 : vector<8x64xi1> to vector<8x64xi32>
    %8 = arith.sitofp %7 : vector<8x64xi32> to vector<8x64xf32>
    %cst = arith.constant dense<0.000000e+00> : vector<8x32xf32>
    %9 = tpu.matmul %8, %2, %cst {dimension_numbers = #tpu.dot_dimension_numbers<[1], [0], [0], [1], [0, 0, 1, 1], [], []>, precision = #tpu.contract_precision<fp32>} : vector<8x64xf32>, vector<64x32xf32>, vector<8x32xf32> -> vector<8x32xf32>
    %10 = vector.broadcast %3 : vector<1x32xf32> to vector<8x32xf32>
    %11 = arith.addf %9, %10 : vector<8x32xf32>
    %12 = vector.extract_strided_slice %0 {offsets = [0, 1], sizes = [8, 1], strides = [1, 1]} : vector<8x4xi32> to vector<8x1xi32>
    %13 = vector.broadcast %12 : vector<8x1xi32> to vector<8x64xi32>
    %14 = arith.cmpi eq, %13, %1 : vector<8x64xi32>
    %15 = arith.extui %14 : vector<8x64xi1> to vector<8x64xi32>
    %16 = arith.sitofp %15 : vector<8x64xi32> to vector<8x64xf32>
    %cst_5 = arith.constant dense<0.000000e+00> : vector<8x32xf32>
    %17 = tpu.matmul %16, %2, %cst_5 {dimension_numbers = #tpu.dot_dimension_numbers<[1], [0], [0], [1], [0, 0, 1, 1], [], []>, precision = #tpu.contract_precision<fp32>} : vector<8x64xf32>, vector<64x32xf32>, vector<8x32xf32> -> vector<8x32xf32>
    %18 = vector.broadcast %3 : vector<1x32xf32> to vector<8x32xf32>
    %19 = arith.addf %17, %18 : vector<8x32xf32>
    %20 = vector.extract_strided_slice %0 {offsets = [0, 2], sizes = [8, 1], strides = [1, 1]} : vector<8x4xi32> to vector<8x1xi32>
    %21 = vector.broadcast %20 : vector<8x1xi32> to vector<8x64xi32>
    %22 = arith.cmpi eq, %21, %1 : vector<8x64xi32>
    %23 = arith.extui %22 : vector<8x64xi1> to vector<8x64xi32>
    %24 = arith.sitofp %23 : vector<8x64xi32> to vector<8x64xf32>
    %cst_6 = arith.constant dense<0.000000e+00> : vector<8x32xf32>
    %25 = tpu.matmul %24, %2, %cst_6 {dimension_numbers = #tpu.dot_dimension_numbers<[1], [0], [0], [1], [0, 0, 1, 1], [], []>, precision = #tpu.contract_precision<fp32>} : vector<8x64xf32>, vector<64x32xf32>, vector<8x32xf32> -> vector<8x32xf32>
    %26 = vector.broadcast %3 : vector<1x32xf32> to vector<8x32xf32>
    %27 = arith.addf %25, %26 : vector<8x32xf32>
    %28 = vector.extract_strided_slice %0 {offsets = [0, 3], sizes = [8, 1], strides = [1, 1]} : vector<8x4xi32> to vector<8x1xi32>
    %29 = vector.broadcast %28 : vector<8x1xi32> to vector<8x64xi32>
    %30 = arith.cmpi eq, %29, %1 : vector<8x64xi32>
    %31 = arith.extui %30 : vector<8x64xi1> to vector<8x64xi32>
    %32 = arith.sitofp %31 : vector<8x64xi32> to vector<8x64xf32>
    %cst_7 = arith.constant dense<0.000000e+00> : vector<8x32xf32>
    %33 = tpu.matmul %32, %2, %cst_7 {dimension_numbers = #tpu.dot_dimension_numbers<[1], [0], [0], [1], [0, 0, 1, 1], [], []>, precision = #tpu.contract_precision<fp32>} : vector<8x64xf32>, vector<64x32xf32>, vector<8x32xf32> -> vector<8x32xf32>
    %34 = vector.broadcast %3 : vector<1x32xf32> to vector<8x32xf32>
    %35 = arith.addf %33, %34 : vector<8x32xf32>
    %36 = tpu.concatenate %11, %19, %27, %35 in 1 : vector<8x32xf32>, vector<8x32xf32>, vector<8x32xf32>, vector<8x32xf32> -> vector<8x128xf32>
    %c0_8 = arith.constant 0 : index
    %c0_9 = arith.constant 0 : index
    %37 = vector.load %arg4[%c0_8, %c0_9] : memref<8x128xf32, #tpu.memory_space<vmem>>, vector<8x128xf32>
    tpu.vector_store %arg4[%c0_8, %c0_9], %36 {strides = array<i32>} : memref<8x128xf32, #tpu.memory_space<vmem>>, vector<8x128xf32>,
    return
  }
  func.func @transform_0(%arg0: i32) -> (i32, i32) {
    %c0_i32 = arith.constant 0 : i32
    %c0_i32_0 = arith.constant 0 : i32
    return %arg0, %c0_i32 : i32, i32
  }
  func.func @transform_1(%arg0: i32) -> (i32, i32) {
    %c0_i32 = arith.constant 0 : i32
    %c0_i32_0 = arith.constant 0 : i32
    %c0_i32_1 = arith.constant 0 : i32
    return %c0_i32, %c0_i32_0 : i32, i32
  }
  func.func @transform_2(%arg0: i32) -> (i32, i32) {
    %c0_i32 = arith.constant 0 : i32
    %c0_i32_0 = arith.constant 0 : i32
    %c0_i32_1 = arith.constant 0 : i32
    return %c0_i32, %c0_i32_0 : i32, i32
  }
  func.func @transform_3(%arg0: i32) -> (i32, i32) {
    %c0_i32 = arith.constant 0 : i32
    %c0_i32_0 = arith.constant 0 : i32
    return %arg0, %c0_i32 : i32, i32
  }
}

</mosaic_0001>

<bundles_post_ra>
// kernel: tpu_custom_call.1
= control target key start
LH: loop header
LB: loop body
LE: loop exit
PB: predicated region body
PF: predicated region fallthrough
CT: control target
= control target key end

     0   :  { %v2976_v2 = vmov 0   ;;  %v2977_v3 = vmov 2   ;;  %v2978_v14 = vmov 0.0   ;;  %s3648_s0 = inlined_call_operand.vmem [shape: s32[8,4], index: 0, kind: input, shape index: {}]   ;;  %s3649_s1 = inlined_call_operand.vmem [shape: f32[64,32], index: 1, kind: input, shape index: {}]   ;;  %s3650_s2 = inlined_call_operand.vmem [shape: f32[1,32], index: 2, kind: input, shape index: {}]   ;;  %s3651_s3 = inlined_call_operand.hbm [shape: f32[8,128], index: 3, kind: output, shape index: {}]  }
   0x1   :  { %v3009_v0 = vld [vmem:[%s3648_s0] sm:$0xff]  ;;  %v25_v1 = vld [vmem:[%s3649_s1 + $0x38] sm:$0xff]  ;;  %2949 = vset.pattern.permute.xlu0 %v2976_v2  ;;  %2951 = vset.pattern.permute.xlu1 %v2977_v3  ;;  %v24_v5 = vld [vmem:[%s3649_s1 + $0x30] sm:$0xff] }
   0x2   :  { %v3014_v4 = vand.u32 4294901760, %v25_v1  ;;  %v23_v6 = vld [vmem:[%s3649_s1 + $0x28] sm:$0xff]  ;;  %v22_v7 = vld [vmem:[%s3649_s1 + $0x20] sm:$0xff]  ;;  %28 = vperm.xlu0 %2949, %v3009_v0   ;;  %1127 = vperm.xlu1 %2951, %v3009_v0   ;;  %v3027_v8 = vand.u32 4294901760, %v24_v5  ;;  %v21_v11 = vld [vmem:[%s3649_s1 + $0x18] sm:$0xff] }
   0x3   :  { %v3029_v9 = vand.u32 4294901760, %v23_v6  ;;  %v3031_v10 = vand.u32 4294901760, %v22_v7  ;;  %v20_v12 = vld [vmem:[%s3649_s1 + $0x10] sm:$0xff]  ;;  %v19_v13 = vld [vmem:[%s3649_s1 + $0x8] sm:$0xff]  ;;  %2502 = vmatprep.subr.mxu1 %v2978_v14  ;;  %2483 = vmatprep.subr.mxu0 %v2978_v14  ;;  %v3047_v16 = vand.u32 4294901760, %v21_v11  ;;  %v18_v19 = vld [vmem:[%s3649_s1] sm:$0xff] }
   0x4   :  { %v3044_v15 = vsub.f32 %v25_v1, %v3014_v4  ;;  %v3049_v17 = vand.u32 4294901760, %v20_v12  ;;  %v3051_v18 = vand.u32 4294901760, %v19_v13 }
   0x5   :  { %8 = vsyncpa [#allocation3], 0  ;;  %v3057_v20 = vsub.f32 %v24_v5, %v3027_v8  ;;  %v3060_v21 = vsub.f32 %v23_v6, %v3029_v9  ;;  %v3063_v22 = vsub.f32 %v22_v7, %v3031_v10  ;;  %2484 = vmatpush3.msra.mxu0 %v3014_v4  ;;  %vm2979_vm0 = vmmov 0   ;;  %s2983_s30 = smov 64   ;;  %s2984_s4 = smov 96  }
   0x6   :  { %2518 = vmatprep.mubr.msk.f32.mxu1 %vm2979_vm0, %v2978_v14  ;;  %v3069_v23 = vand.u32 4294901760, %v3044_v15  ;;  %v3072_v24 = vsub.f32 %v21_v11, %v3047_v16  ;;  %2485 = vmatprep.subr.mxu0 %v2978_v14  ;;  %v3076_v25 = vsub.f32 %v20_v12, %v3049_v17  ;;  %v2980_v26 = vmov 1   ;;  %s2985_s5 = smov [#allocation2]  }
   0x7   :  { %2499 = vmatprep.mubr.msk.f32.mxu0 %vm2979_vm0, %v2978_v14  ;;  %2950 = vset.pattern.permute.xlu0 %v2980_v26  ;;  %v3081_v27 = vand.u32 4294901760, %v3057_v20  ;;  %v3084_v28 = vand.u32 4294901760, %v3060_v21  ;;  %v3087_v29 = vand.u32 4294901760, %v3063_v22  ;;  %v3090_v30 = vand.u32 4294901760, %v18_v19  ;;  %s2242_s6 = sshll.u32 %s2985_s5, 4  ;;  %s2243_s6 = int_to_ptr.vmem [resolvable:$true] %s2242_s6 }
   0x8   :  { %2486 = vmatpush3.msra.mxu0 %v3027_v8  ;;  %581 = vperm.xlu0 %2950, %v3009_v0   ;;  %v146_v31 = vsub.f32 %v3044_v15, %v3069_v23  ;;  %v3096_v32 = vand.u32 4294901760, %v3072_v24  ;;  %v3100_v33 = vsub.f32 %v19_v13, %v3051_v18  ;;  %v3112_v38 = vand.u32 4294901760, %v3076_v25  ;;  %s2954_s7 = scalar_lea.vmem %s2243_s6, 128  ;;  %p2959_p1 = scmp.lt.s32.totalorder %s2243_s6, %s2243_s6 }
   0x9   :  { %2487 = vmatprep.subr.mxu0 %v2978_v14  ;;  %v153_v34 = vsub.f32 %v3057_v20, %v3081_v27  ;;  %v160_v35 = vsub.f32 %v3060_v21, %v3084_v28  ;;  %v167_v37 = vsub.f32 %v3063_v22, %v3087_v29  ;;  %v3116_v39 = vsub.f32 %v18_v19, %v3090_v30  ;;  %p2955_p0 = scmp.ne.s32.totalorder %s2243_s6, %s2954_s7  ;;  %p2960_p2 = scmp.lt.s32.totalorder %s2954_s7, %s2954_s7 }
   0xa   :  { %2488 = vmatpush3.msra.mxu0 %v3029_v9  ;;  %v3107_v36 = vand.u32 4294901760, %v146_v31  ;;  %v174_v42 = vsub.f32 %v3072_v24, %v3096_v32  ;;  %v3127_v43 = vand.u32 4294901760, %v3100_v33  ;;  %v181_v45 = vsub.f32 %v3076_v25, %v3112_v38 }
   0xb   :  { %2489 = vmatprep.subr.mxu0 %v2978_v14  ;;  %v3118_v40 = vand.u32 4294901760, %v153_v34  ;;  %v3122_v41 = vand.u32 4294901760, %v160_v35  ;;  %v3133_v44 = vand.u32 4294901760, %v167_v37  ;;  %v3138_v46 = vand.u32 4294901760, %v3116_v39  ;;  %p2961_p3 = por %p2960_p2, %p2959_p1 }
   0xc   :  { %2490 = vmatpush3.msra.mxu0 %v3031_v10  ;;  %2503 = vmatpush3.msra.mxu1 %v3107_v36  ;;  %v3144_v47 = vand.u32 4294901760, %v174_v42  ;;  %v188_v48 = vsub.f32 %v3100_v33, %v3127_v43  ;;  %v3152_v49 = vand.u32 4294901760, %v181_v45  ;;  %v2981_v52 = vmov 3  }
   0xd   :  { %2491 = vmatprep.subr.mxu0 %v2978_v14  ;;  %2504 = vmatprep.subr.mxu1 %v2978_v14  ;;  %v195_v50 = vsub.f32 %v3116_v39, %v3138_v46  ;;  %v16_v54 = vlaneseq  ;;  %vm39_vm1 = vcmask 523264   ;;  %vm2230_vm6 = vcmask 261120   ;;  %p2962_p4 = pnand %p2961_p3, %p2955_p0 }
   0xe   :  { %2492 = vmatpush3.msra.mxu0 %v3047_v16  ;;  %2505 = vmatpush3.msra.mxu1 %v3118_v40  ;;  %v3160_v51 = vand.u32 4294901760, %v188_v48  ;;  %vm2233_vm7 = vcmask 785408  }
   0xf   :  { %2493 = vmatprep.subr.mxu0 %v2978_v14  ;;  %2506 = vmatprep.subr.mxu1 %v2978_v14  ;;  %v3165_v53 = vand.u32 4294901760, %v195_v50  ;;  %v3173_v55 = vand.u32 127, %v16_v54 }
  0x10   :  { %2494 = vmatpush3.msra.mxu0 %v3049_v17  ;;  %2507 = vmatpush3.msra.mxu1 %v3122_v41 }
  0x11   :  { %2495 = vmatprep.subr.mxu0 %v2978_v14  ;;  %2508 = vmatprep.subr.mxu1 %v2978_v14 }
  0x12   :  { %2496 = vmatpush3.msra.mxu0 %v3051_v18  ;;  %2509 = vmatpush3.msra.mxu1 %v3133_v44 }
  0x13   :  { %2497 = vmatprep.subr.mxu0 %v2978_v14  ;;  %2510 = vmatprep.subr.mxu1 %v2978_v14 }
  0x14   :  { %2498 = vmatpush3.msra.mxu0 %v3090_v30  ;;  %2511 = vmatpush3.msra.mxu1 %v3144_v47 }
  0x15   :  { %2521 = vmatprep.subr.mxu0 %v2978_v14  ;;  %2512 = vmatprep.subr.mxu1 %v2978_v14 }
  0x16   :  { %2952 = vset.pattern.permute.xlu1 %v2981_v52  ;;  %2513 = vmatpush3.msra.mxu1 %v3152_v49 }
  0x17   :  { %1673 = vperm.xlu1 %2952, %v3009_v0   ;;  %2514 = vmatprep.subr.mxu1 %v2978_v14 }
  0x18   :  { %2953 = vset.pattern.permute.xlu0 %v2981_v52  ;;  %2515 = vmatpush3.msra.mxu1 %v3160_v51 }
  0x19   :  { %2516 = vmatprep.subr.mxu1 %v2978_v14 }
  0x1a   :  { %2517 = vmatpush3.msra.mxu1 %v3165_v53 }
  0x1b   :  { %2540 = vmatprep.subr.mxu1 %v2978_v14 }
  0x7d   :  { %v29_v56 = vpop.permute.xlu0 %28  ;;  %v1128_v7 = vpop.permute.xlu1 %1127 }
  0x7e   :  { %vm30_vm2 = vcmp.eq.s32.totalorder %v29_v56, %v3173_v55  ;;  %vm1129_vm4 = vcmp.eq.s32.totalorder %v1128_v7, %v3173_v55 }
  0x7f   :  { %v3177_v57 = vsel %vm30_vm2, 1.0, %v2978_v14  ;;  %v3384_v11 = vsel %vm1129_vm4, 1.0, %v2978_v14 }
  0x80   :  { %v41_v58 = vsel %vm39_vm1, %v3177_v57, 0  ;;  %2519 = vmatmul.mubr.msk.f32.vlgmr.msra.gmra.mxu1 %vm39_vm1, %v3177_v57  ;;  %v1133_v12 = vsel %vm39_vm1, %v3384_v11, 0 }
  0x81   :  { %v117_v59 = vsub.f32 %v41_v58, %v41_v58  ;;  %2541 = vmatpush3.msra.mxu1 %v3014_v4  ;;  %2556 = vmatprep.mubr.msk.f32.mxu1 %vm2979_vm0, %v2978_v14  ;;  %v3402_v13 = vsub.f32 %v1133_v12, %v1133_v12 }
  0x82   :  { %2542 = vmatprep.subr.mxu1 %v2978_v14 }
  0x83   :  { %2543 = vmatpush3.msra.mxu1 %v3027_v8  ;;  %v118_v60 = vand.u32 4294901760, %v117_v59  ;;  %v582_v63 = vpop.permute.xlu0 %581  ;;  %v1210_v19 = vand.u32 4294901760, %v3402_v13 }
  0x84   :  { %2544 = vmatprep.subr.mxu1 %v2978_v14  ;;  %vm583_vm3 = vcmp.eq.s32.totalorder %v582_v63, %v3173_v55 }
  0x85   :  { %2545 = vmatpush3.msra.mxu1 %v3029_v9  ;;  %v119_v61 = vsub.f32 %v117_v59, %v118_v60  ;;  %v3259_v0 = vsel %vm583_vm3, 1.0, %v2978_v14  ;;  %v1211_v26 = vsub.f32 %v3402_v13, %v1210_v19 }
  0x86   :  { %2546 = vmatprep.subr.mxu1 %v2978_v14  ;;  %v587_v1 = vsel %vm39_vm1, %v3259_v0, 0 }
  0x87   :  { %2547 = vmatpush3.msra.mxu1 %v3031_v10  ;;  %v120_v62 = vand.u32 4294901760, %v119_v61  ;;  %v3277_v2 = vsub.f32 %v587_v1, %v587_v1  ;;  %v1212_v31 = vand.u32 4294901760, %v1211_v26 }
  0x88   :  { %2548 = vmatprep.subr.mxu1 %v2978_v14 }
  0x89   :  { %2549 = vmatpush3.msra.mxu1 %v3047_v16  ;;  %2500 = vmatmul.mubr.f32.vlgmr.msra.gmra.mxu0 %v120_v62  ;;  %v664_v3 = vand.u32 4294901760, %v3277_v2 }
  0x8a   :  { %2522 = vmatpush3.msra.mxu0 %v3044_v15  ;;  %2550 = vmatprep.subr.mxu1 %v2978_v14 }
  0x8b   :  { %2523 = vmatprep.subr.mxu0 %v2978_v14  ;;  %2551 = vmatpush3.msra.mxu1 %v3049_v17  ;;  %v665_v5 = vsub.f32 %v3277_v2, %v664_v3 }
  0x8c   :  { %2524 = vmatpush3.msra.mxu0 %v3057_v20  ;;  %2552 = vmatprep.subr.mxu1 %v2978_v14 }
  0x8d   :  { %2525 = vmatprep.subr.mxu0 %v2978_v14  ;;  %2553 = vmatpush3.msra.mxu1 %v3051_v18  ;;  %v666_v6 = vand.u32 4294901760, %v665_v5 }
  0x8e   :  { %2526 = vmatpush3.msra.mxu0 %v3060_v21  ;;  %2554 = vmatprep.subr.mxu1 %v2978_v14 }
  0x8f   :  { %2527 = vmatprep.subr.mxu0 %v2978_v14  ;;  %2555 = vmatpush3.msra.mxu1 %v3090_v30 }
  0x90   :  { %2528 = vmatpush3.msra.mxu0 %v3063_v22  ;;  %2557 = vmatmul.mubr.f32.vlgmr.msra.gmra.mxu1 %v118_v60 }
  0x91   :  { %2578 = vmatprep.subr.mxu1 %v2978_v14  ;;  %2529 = vmatprep.subr.mxu0 %v2978_v14 }
  0x92   :  { %2579 = vmatpush3.msra.mxu1 %v3014_v4  ;;  %2530 = vmatpush3.msra.mxu0 %v3072_v24  ;;  %v1674_v34 = vpop.permute.xlu1 %1673 }
  0x93   :  { %2580 = vmatprep.subr.mxu1 %v2978_v14  ;;  %2531 = vmatprep.subr.mxu0 %v2978_v14  ;;  %vm1675_vm5 = vcmp.eq.s32.totalorder %v1674_v34, %v3173_v55 }
  0x94   :  { %2581 = vmatpush3.msra.mxu1 %v3027_v8  ;;  %2532 = vmatpush3.msra.mxu0 %v3076_v25  ;;  %v3509_v35 = vsel %vm1675_vm5, 1.0, %v2978_v14 }
  0x95   :  { %2582 = vmatprep.subr.mxu1 %v2978_v14  ;;  %2533 = vmatprep.subr.mxu0 %v2978_v14 }
  0x96   :  { %2583 = vmatpush3.msra.mxu1 %v3029_v9  ;;  %2534 = vmatpush3.msra.mxu0 %v3100_v33 }
  0x97   :  { %2584 = vmatprep.subr.mxu1 %v2978_v14  ;;  %2535 = vmatprep.subr.mxu0 %v2978_v14 }
  0x98   :  { %2585 = vmatpush3.msra.mxu1 %v3031_v10  ;;  %2536 = vmatpush3.msra.mxu0 %v3116_v39 }
  0x99   :  { %2537 = vmatprep.mubr.msk.f32.mxu0 %vm2979_vm0, %v2978_v14  ;;  %2586 = vmatprep.subr.mxu1 %v2978_v14 }
  0x9a   :  { %2538 = vmatmul.mubr.f32.vlgmr.msra.gmra.mxu0 %v117_v59  ;;  %2559 = vmatprep.subr.mxu0 %v2978_v14 }
  0x9b   :  { %2587 = vmatpush3.msra.mxu1 %v3047_v16  ;;  %2560 = vmatpush3.msra.mxu0 %v3069_v23 }
  0x9c   :  { %2588 = vmatprep.subr.mxu1 %v2978_v14  ;;  %2561 = vmatprep.subr.mxu0 %v2978_v14 }
  0x9d   :  { %2589 = vmatpush3.msra.mxu1 %v3049_v17  ;;  %2562 = vmatpush3.msra.mxu0 %v3081_v27 }
  0x9e   :  { %2590 = vmatprep.subr.mxu1 %v2978_v14  ;;  %2563 = vmatprep.subr.mxu0 %v2978_v14 }
  0x9f   :  { %2591 = vmatpush3.msra.mxu1 %v3051_v18  ;;  %2564 = vmatpush3.msra.mxu0 %v3084_v28 }
  0xa0   :  { %2592 = vmatprep.subr.mxu1 %v2978_v14  ;;  %2565 = vmatprep.subr.mxu0 %v2978_v14 }
  0xa1   :  { %2593 = vmatpush3.msra.mxu1 %v3090_v30  ;;  %2594 = vmatprep.mubr.msk.f32.mxu1 %vm2979_vm0, %v2978_v14 }
  0xa2   :  { %2566 = vmatpush3.msra.mxu0 %v3087_v29  ;;  %2595 = vmatmul.mubr.msk.f32.vlgmr.msra.gmra.mxu1 %vm39_vm1, %v3177_v57 }
  0xa3   :  { %2616 = vmatprep.subr.mxu1 %v2978_v14  ;;  %2567 = vmatprep.subr.mxu0 %v2978_v14 }
  0xa4   :  { %2617 = vmatpush3.msra.mxu1 %v3107_v36  ;;  %2568 = vmatpush3.msra.mxu0 %v3096_v32 }
  0xa5   :  { %2618 = vmatprep.subr.mxu1 %v2978_v14  ;;  %2569 = vmatprep.subr.mxu0 %v2978_v14 }
  0xa6   :  { %2619 = vmatpush3.msra.mxu1 %v3118_v40  ;;  %2570 = vmatpush3.msra.mxu0 %v3112_v38 }
  0xa7   :  { %2620 = vmatprep.subr.mxu1 %v2978_v14  ;;  %2571 = vmatprep.subr.mxu0 %v2978_v14 }
  0xa8   :  { %2621 = vmatpush3.msra.mxu1 %v3122_v41  ;;  %2572 = vmatpush3.msra.mxu0 %v3127_v43 }
  0xa9   :  { %2622 = vmatprep.subr.mxu1 %v2978_v14  ;;  %2573 = vmatprep.subr.mxu0 %v2978_v14 }
  0xaa   :  { %2623 = vmatpush3.msra.mxu1 %v3133_v44  ;;  %2574 = vmatpush3.msra.mxu0 %v3138_v46 }
  0xab   :  { %2575 = vmatprep.mubr.msk.f32.mxu0 %vm2979_vm0, %v2978_v14  ;;  %2624 = vmatprep.subr.mxu1 %v2978_v14 }
  0xac   :  { %2576 = vmatmul.mubr.msk.f32.vlgmr.msra.gmra.mxu0 %vm39_vm1, %v3177_v57  ;;  %2597 = vmatprep.subr.mxu0 %v2978_v14 }
  0xad   :  { %2625 = vmatpush3.msra.mxu1 %v3144_v47  ;;  %2598 = vmatpush3.msra.mxu0 %v3014_v4 }
  0xae   :  { %2626 = vmatprep.subr.mxu1 %v2978_v14  ;;  %2599 = vmatprep.subr.mxu0 %v2978_v14 }
  0xaf   :  { %2627 = vmatpush3.msra.mxu1 %v3152_v49  ;;  %2600 = vmatpush3.msra.mxu0 %v3027_v8 }
  0xb0   :  { %2628 = vmatprep.subr.mxu1 %v2978_v14  ;;  %2601 = vmatprep.subr.mxu0 %v2978_v14 }
  0xb1   :  { %2629 = vmatpush3.msra.mxu1 %v3160_v51  ;;  %2602 = vmatpush3.msra.mxu0 %v3029_v9 }
  0xb2   :  { %2630 = vmatprep.subr.mxu1 %v2978_v14  ;;  %2603 = vmatprep.subr.mxu0 %v2978_v14 }
  0xb3   :  { %2631 = vmatpush3.msra.mxu1 %v3165_v53  ;;  %2632 = vmatprep.mubr.msk.f32.mxu1 %vm2979_vm0, %v2978_v14 }
  0xb4   :  { %2604 = vmatpush3.msra.mxu0 %v3031_v10  ;;  %2633 = vmatmul.mubr.msk.f32.vlgmr.msra.gmra.mxu1 %vm39_vm1, %v3259_v0 }
  0xb5   :  { %2654 = vmatprep.subr.mxu1 %v2978_v14  ;;  %2605 = vmatprep.subr.mxu0 %v2978_v14 }
  0xb6   :  { %2655 = vmatpush3.msra.mxu1 %v3014_v4  ;;  %2606 = vmatpush3.msra.mxu0 %v3047_v16 }
  0xb7   :  { %2656 = vmatprep.subr.mxu1 %v2978_v14  ;;  %2607 = vmatprep.subr.mxu0 %v2978_v14 }
  0xb8   :  { %2657 = vmatpush3.msra.mxu1 %v3027_v8  ;;  %2608 = vmatpush3.msra.mxu0 %v3049_v17 }
  0xb9   :  { %2658 = vmatprep.subr.mxu1 %v2978_v14  ;;  %2609 = vmatprep.subr.mxu0 %v2978_v14 }
  0xba   :  { %2659 = vmatpush3.msra.mxu1 %v3029_v9  ;;  %2610 = vmatpush3.msra.mxu0 %v3051_v18 }
  0xbb   :  { %2660 = vmatprep.subr.mxu1 %v2978_v14  ;;  %2611 = vmatprep.subr.mxu0 %v2978_v14 }
  0xbc   :  { %2661 = vmatpush3.msra.mxu1 %v3031_v10  ;;  %2612 = vmatpush3.msra.mxu0 %v3090_v30 }
  0xbd   :  { %2613 = vmatprep.mubr.msk.f32.mxu0 %vm2979_vm0, %v2978_v14  ;;  %2662 = vmatprep.subr.mxu1 %v2978_v14 }
  0xbe   :  { %2614 = vmatmul.mubr.f32.vlgmr.msra.gmra.mxu0 %v666_v6  ;;  %2635 = vmatprep.subr.mxu0 %v2978_v14 }
  0xbf   :  { %2663 = vmatpush3.msra.mxu1 %v3047_v16  ;;  %2636 = vmatpush3.msra.mxu0 %v3044_v15 }
  0xc0   :  { %2664 = vmatprep.subr.mxu1 %v2978_v14  ;;  %2637 = vmatprep.subr.mxu0 %v2978_v14 }
  0xc1   :  { %2665 = vmatpush3.msra.mxu1 %v3049_v17  ;;  %2638 = vmatpush3.msra.mxu0 %v3057_v20 }
  0xc2   :  { %2666 = vmatprep.subr.mxu1 %v2978_v14  ;;  %2639 = vmatprep.subr.mxu0 %v2978_v14 }
  0xc3   :  { %2667 = vmatpush3.msra.mxu1 %v3051_v18  ;;  %2640 = vmatpush3.msra.mxu0 %v3060_v21 }
  0xc4   :  { %2668 = vmatprep.subr.mxu1 %v2978_v14  ;;  %2641 = vmatprep.subr.mxu0 %v2978_v14 }
  0xc5   :  { %2669 = vmatpush3.msra.mxu1 %v3090_v30  ;;  %2670 = vmatprep.mubr.msk.f32.mxu1 %vm2979_vm0, %v2978_v14 }
  0xc6   :  { %2642 = vmatpush3.msra.mxu0 %v3063_v22  ;;  %2671 = vmatmul.mubr.f32.vlgmr.msra.gmra.mxu1 %v664_v3 }
  0xc7   :  { %2692 = vmatprep.subr.mxu1 %v2978_v14  ;;  %2643 = vmatprep.subr.mxu0 %v2978_v14 }
  0xc8   :  { %2693 = vmatpush3.msra.mxu1 %v3014_v4  ;;  %2644 = vmatpush3.msra.mxu0 %v3072_v24 }
  0xc9   :  { %2694 = vmatprep.subr.mxu1 %v2978_v14  ;;  %2645 = vmatprep.subr.mxu0 %v2978_v14 }
  0xca   :  { %2695 = vmatpush3.msra.mxu1 %v3027_v8  ;;  %2646 = vmatpush3.msra.mxu0 %v3076_v25 }
  0xcb   :  { %2696 = vmatprep.subr.mxu1 %v2978_v14  ;;  %2647 = vmatprep.subr.mxu0 %v2978_v14 }
  0xcc   :  { %2697 = vmatpush3.msra.mxu1 %v3029_v9  ;;  %2648 = vmatpush3.msra.mxu0 %v3100_v33 }
  0xcd   :  { %2698 = vmatprep.subr.mxu1 %v2978_v14  ;;  %2649 = vmatprep.subr.mxu0 %v2978_v14 }
  0xce   :  { %2699 = vmatpush3.msra.mxu1 %v3031_v10  ;;  %2650 = vmatpush3.msra.mxu0 %v3116_v39 }
  0xcf   :  { %2651 = vmatprep.mubr.msk.f32.mxu0 %vm2979_vm0, %v2978_v14  ;;  %2700 = vmatprep.subr.mxu1 %v2978_v14 }
  0xd0   :  { %2652 = vmatmul.mubr.f32.vlgmr.msra.gmra.mxu0 %v3277_v2  ;;  %2673 = vmatprep.subr.mxu0 %v2978_v14 }
  0xd1   :  { %2701 = vmatpush3.msra.mxu1 %v3047_v16  ;;  %2674 = vmatpush3.msra.mxu0 %v3069_v23 }
  0xd2   :  { %2702 = vmatprep.subr.mxu1 %v2978_v14  ;;  %2675 = vmatprep.subr.mxu0 %v2978_v14 }
  0xd3   :  { %2703 = vmatpush3.msra.mxu1 %v3049_v17  ;;  %2676 = vmatpush3.msra.mxu0 %v3081_v27 }
  0xd4   :  { %2704 = vmatprep.subr.mxu1 %v2978_v14  ;;  %2677 = vmatprep.subr.mxu0 %v2978_v14 }
  0xd5   :  { %2705 = vmatpush3.msra.mxu1 %v3051_v18  ;;  %2678 = vmatpush3.msra.mxu0 %v3084_v28 }
  0xd6   :  { %2706 = vmatprep.subr.mxu1 %v2978_v14  ;;  %2679 = vmatprep.subr.mxu0 %v2978_v14 }
  0xd7   :  { %2707 = vmatpush3.msra.mxu1 %v3090_v30  ;;  %2708 = vmatprep.mubr.msk.f32.mxu1 %vm2979_vm0, %v2978_v14 }
  0xd8   :  { %2680 = vmatpush3.msra.mxu0 %v3087_v29  ;;  %2709 = vmatmul.mubr.msk.f32.vlgmr.msra.gmra.mxu1 %vm39_vm1, %v3259_v0 }
  0xd9   :  { %2730 = vmatprep.subr.mxu1 %v2978_v14  ;;  %2681 = vmatprep.subr.mxu0 %v2978_v14 }
  0xda   :  { %2731 = vmatpush3.msra.mxu1 %v3107_v36  ;;  %2682 = vmatpush3.msra.mxu0 %v3096_v32 }
  0xdb   :  { %2732 = vmatprep.subr.mxu1 %v2978_v14  ;;  %2683 = vmatprep.subr.mxu0 %v2978_v14 }
  0xdc   :  { %2733 = vmatpush3.msra.mxu1 %v3118_v40  ;;  %2684 = vmatpush3.msra.mxu0 %v3112_v38 }
  0xdd   :  { %2734 = vmatprep.subr.mxu1 %v2978_v14  ;;  %2685 = vmatprep.subr.mxu0 %v2978_v14 }
  0xde   :  { %2735 = vmatpush3.msra.mxu1 %v3122_v41  ;;  %2686 = vmatpush3.msra.mxu0 %v3127_v43 }
  0xdf   :  { %2736 = vmatprep.subr.mxu1 %v2978_v14  ;;  %2687 = vmatprep.subr.mxu0 %v2978_v14 }
  0xe0   :  { %2737 = vmatpush3.msra.mxu1 %v3133_v44  ;;  %2688 = vmatpush3.msra.mxu0 %v3138_v46 }
  0xe1   :  { %2689 = vmatprep.mubr.msk.f32.mxu0 %vm2979_vm0, %v2978_v14  ;;  %2738 = vmatprep.subr.mxu1 %v2978_v14 }
  0xe2   :  { %2690 = vmatmul.mubr.msk.f32.vlgmr.msra.gmra.mxu0 %vm39_vm1, %v3259_v0  ;;  %2711 = vmatprep.subr.mxu0 %v2978_v14 }
  0xe3   :  { %2739 = vmatpush3.msra.mxu1 %v3144_v47  ;;  %2712 = vmatpush3.msra.mxu0 %v3014_v4 }
  0xe4   :  { %2740 = vmatprep.subr.mxu1 %v2978_v14  ;;  %2713 = vmatprep.subr.mxu0 %v2978_v14 }
  0xe5   :  { %2741 = vmatpush3.msra.mxu1 %v3152_v49  ;;  %2714 = vmatpush3.msra.mxu0 %v3027_v8 }
  0xe6   :  { %2742 = vmatprep.subr.mxu1 %v2978_v14  ;;  %2715 = vmatprep.subr.mxu0 %v2978_v14 }
  0xe7   :  { %2743 = vmatpush3.msra.mxu1 %v3160_v51  ;;  %2716 = vmatpush3.msra.mxu0 %v3029_v9 }
  0xe8   :  { %2744 = vmatprep.subr.mxu1 %v2978_v14  ;;  %2717 = vmatprep.subr.mxu0 %v2978_v14 }
  0xe9   :  { %2745 = vmatpush3.msra.mxu1 %v3165_v53  ;;  %2746 = vmatprep.mubr.msk.f32.mxu1 %vm2979_vm0, %v2978_v14 }
  0xea   :  { %2718 = vmatpush3.msra.mxu0 %v3031_v10  ;;  %2747 = vmatmul.mubr.msk.f32.vlgmr.msra.gmra.mxu1 %vm39_vm1, %v3384_v11 }
  0xeb   :  { %2768 = vmatprep.subr.mxu1 %v2978_v14  ;;  %2719 = vmatprep.subr.mxu0 %v2978_v14 }
  0xec   :  { %2769 = vmatpush3.msra.mxu1 %v3014_v4  ;;  %2720 = vmatpush3.msra.mxu0 %v3047_v16 }
  0xed   :  { %2770 = vmatprep.subr.mxu1 %v2978_v14  ;;  %2721 = vmatprep.subr.mxu0 %v2978_v14 }
  0xee   :  { %2771 = vmatpush3.msra.mxu1 %v3027_v8  ;;  %2722 = vmatpush3.msra.mxu0 %v3049_v17 }
  0xef   :  { %2772 = vmatprep.subr.mxu1 %v2978_v14  ;;  %2723 = vmatprep.subr.mxu0 %v2978_v14 }
  0xf0   :  { %2773 = vmatpush3.msra.mxu1 %v3029_v9  ;;  %2724 = vmatpush3.msra.mxu0 %v3051_v18 }
  0xf1   :  { %2774 = vmatprep.subr.mxu1 %v2978_v14  ;;  %2725 = vmatprep.subr.mxu0 %v2978_v14 }
  0xf2   :  { %2775 = vmatpush3.msra.mxu1 %v3031_v10  ;;  %2726 = vmatpush3.msra.mxu0 %v3090_v30 }
  0xf3   :  { %2727 = vmatprep.mubr.msk.f32.mxu0 %vm2979_vm0, %v2978_v14  ;;  %2776 = vmatprep.subr.mxu1 %v2978_v14 }
  0xf4   :  { %2728 = vmatmul.mubr.f32.vlgmr.msra.gmra.mxu0 %v1212_v31  ;;  %2749 = vmatprep.subr.mxu0 %v2978_v14 }
  0xf5   :  { %2777 = vmatpush3.msra.mxu1 %v3047_v16  ;;  %2750 = vmatpush3.msra.mxu0 %v3044_v15 }
  0xf6   :  { %2778 = vmatprep.subr.mxu1 %v2978_v14  ;;  %2751 = vmatprep.subr.mxu0 %v2978_v14 }
  0xf7   :  { %2779 = vmatpush3.msra.mxu1 %v3049_v17  ;;  %2752 = vmatpush3.msra.mxu0 %v3057_v20 }
  0xf8   :  { %2780 = vmatprep.subr.mxu1 %v2978_v14  ;;  %2753 = vmatprep.subr.mxu0 %v2978_v14 }
  0xf9   :  { %2781 = vmatpush3.msra.mxu1 %v3051_v18  ;;  %2754 = vmatpush3.msra.mxu0 %v3060_v21 }
  0xfa   :  { %2782 = vmatprep.subr.mxu1 %v2978_v14  ;;  %2755 = vmatprep.subr.mxu0 %v2978_v14 }
  0xfb   :  { %2783 = vmatpush3.msra.mxu1 %v3090_v30  ;;  %2784 = vmatprep.mubr.msk.f32.mxu1 %vm2979_vm0, %v2978_v14 }
  0xfc   :  { %2756 = vmatpush3.msra.mxu0 %v3063_v22  ;;  %2785 = vmatmul.mubr.f32.vlgmr.msra.gmra.mxu1 %v1210_v19 }
  0xfd   :  { %2806 = vmatprep.subr.mxu1 %v2978_v14  ;;  %2757 = vmatprep.subr.mxu0 %v2978_v14 }
  0xfe   :  { %2807 = vmatpush3.msra.mxu1 %v3014_v4  ;;  %2758 = vmatpush3.msra.mxu0 %v3072_v24 }
  0xff   :  { %2808 = vmatprep.subr.mxu1 %v2978_v14  ;;  %2759 = vmatprep.subr.mxu0 %v2978_v14 }
 0x100   :  { %2809 = vmatpush3.msra.mxu1 %v3027_v8  ;;  %2760 = vmatpush3.msra.mxu0 %v3076_v25 }
 0x101   :  { %2810 = vmatprep.subr.mxu1 %v2978_v14  ;;  %2761 = vmatprep.subr.mxu0 %v2978_v14 }
 0x102   :  { %2811 = vmatpush3.msra.mxu1 %v3029_v9  ;;  %2762 = vmatpush3.msra.mxu0 %v3100_v33 }
 0x103   :  { %2812 = vmatprep.subr.mxu1 %v2978_v14  ;;  %2763 = vmatprep.subr.mxu0 %v2978_v14 }
 0x104   :  { %2813 = vmatpush3.msra.mxu1 %v3031_v10  ;;  %2764 = vmatpush3.msra.mxu0 %v3116_v39 }
 0x105   :  { %2765 = vmatprep.mubr.msk.f32.mxu0 %vm2979_vm0, %v2978_v14  ;;  %2814 = vmatprep.subr.mxu1 %v2978_v14 }
 0x106   :  { %2766 = vmatmul.mubr.f32.vlgmr.msra.gmra.mxu0 %v3402_v13  ;;  %2787 = vmatprep.subr.mxu0 %v2978_v14 }
 0x107   :  { %2815 = vmatpush3.msra.mxu1 %v3047_v16  ;;  %2788 = vmatpush3.msra.mxu0 %v3069_v23 }
 0x108   :  { %2816 = vmatprep.subr.mxu1 %v2978_v14  ;;  %2789 = vmatprep.subr.mxu0 %v2978_v14 }
 0x109   :  { %2817 = vmatpush3.msra.mxu1 %v3049_v17  ;;  %2790 = vmatpush3.msra.mxu0 %v3081_v27 }
 0x10a   :  { %2818 = vmatprep.subr.mxu1 %v2978_v14  ;;  %2791 = vmatprep.subr.mxu0 %v2978_v14 }
 0x10b   :  { %2819 = vmatpush3.msra.mxu1 %v3051_v18  ;;  %2792 = vmatpush3.msra.mxu0 %v3084_v28 }
 0x10c   :  { %2820 = vmatprep.subr.mxu1 %v2978_v14  ;;  %2793 = vmatprep.subr.mxu0 %v2978_v14 }
 0x10d   :  { %2821 = vmatpush3.msra.mxu1 %v3090_v30  ;;  %2822 = vmatprep.mubr.msk.f32.mxu1 %vm2979_vm0, %v2978_v14 }
 0x10e   :  { %2794 = vmatpush3.msra.mxu0 %v3087_v29  ;;  %2823 = vmatmul.mubr.msk.f32.vlgmr.msra.gmra.mxu1 %vm39_vm1, %v3384_v11 }
 0x10f   :  { %2844 = vmatprep.subr.mxu1 %v2978_v14  ;;  %2795 = vmatprep.subr.mxu0 %v2978_v14 }
 0x110   :  { %2845 = vmatpush3.msra.mxu1 %v3107_v36  ;;  %2796 = vmatpush3.msra.mxu0 %v3096_v32  ;;  %v1679_v36 = vsel %vm39_vm1, %v3509_v35, 0 }
 0x111   :  { %2846 = vmatprep.subr.mxu1 %v2978_v14  ;;  %2797 = vmatprep.subr.mxu0 %v2978_v14  ;;  %v3527_v37 = vsub.f32 %v1679_v36, %v1679_v36 }
 0x112   :  { %2847 = vmatpush3.msra.mxu1 %v3118_v40  ;;  %2798 = vmatpush3.msra.mxu0 %v3112_v38 }
 0x113   :  { %2848 = vmatprep.subr.mxu1 %v2978_v14  ;;  %2799 = vmatprep.subr.mxu0 %v2978_v14  ;;  %v1756_v40 = vand.u32 4294901760, %v3527_v37 }
 0x114   :  { %2849 = vmatpush3.msra.mxu1 %v3122_v41  ;;  %2800 = vmatpush3.msra.mxu0 %v3127_v43 }
 0x115   :  { %2850 = vmatprep.subr.mxu1 %v2978_v14  ;;  %2801 = vmatprep.subr.mxu0 %v2978_v14  ;;  %v1757_v41 = vsub.f32 %v3527_v37, %v1756_v40 }
 0x116   :  { %2851 = vmatpush3.msra.mxu1 %v3133_v44  ;;  %2802 = vmatpush3.msra.mxu0 %v3138_v46 }
 0x117   :  { %2803 = vmatprep.mubr.msk.f32.mxu0 %vm2979_vm0, %v2978_v14  ;;  %2852 = vmatprep.subr.mxu1 %v2978_v14  ;;  %v1758_v42 = vand.u32 4294901760, %v1757_v41 }
 0x118   :  { %2804 = vmatmul.mubr.msk.f32.vlgmr.msra.gmra.mxu0 %vm39_vm1, %v3384_v11  ;;  %2825 = vmatprep.subr.mxu0 %v2978_v14 }
 0x119   :  { %2853 = vmatpush3.msra.mxu1 %v3144_v47  ;;  %2826 = vmatpush3.msra.mxu0 %v3014_v4 }
 0x11a   :  { %2854 = vmatprep.subr.mxu1 %v2978_v14  ;;  %2827 = vmatprep.subr.mxu0 %v2978_v14 }
 0x11b   :  { %2855 = vmatpush3.msra.mxu1 %v3152_v49  ;;  %2828 = vmatpush3.msra.mxu0 %v3027_v8 }
 0x11c   :  { %2856 = vmatprep.subr.mxu1 %v2978_v14  ;;  %2829 = vmatprep.subr.mxu0 %v2978_v14 }
 0x11d   :  { %2857 = vmatpush3.msra.mxu1 %v3160_v51  ;;  %2830 = vmatpush3.msra.mxu0 %v3029_v9 }
 0x11e   :  { %2858 = vmatprep.subr.mxu1 %v2978_v14  ;;  %2831 = vmatprep.subr.mxu0 %v2978_v14 }
 0x11f   :  { %2859 = vmatpush3.msra.mxu1 %v3165_v53  ;;  %2860 = vmatprep.mubr.msk.f32.mxu1 %vm2979_vm0, %v2978_v14 }
 0x120   :  { %2832 = vmatpush3.msra.mxu0 %v3031_v10  ;;  %2861 = vmatmul.mubr.msk.f32.vlgmr.msra.gmra.mxu1 %vm39_vm1, %v3509_v35 }
 0x121   :  { %2882 = vmatprep.subr.mxu1 %v2978_v14  ;;  %2833 = vmatprep.subr.mxu0 %v2978_v14 }
 0x122   :  { %2883 = vmatpush3.msra.mxu1 %v3014_v4  ;;  %2834 = vmatpush3.msra.mxu0 %v3047_v16 }
 0x123   :  { %2884 = vmatprep.subr.mxu1 %v2978_v14  ;;  %2835 = vmatprep.subr.mxu0 %v2978_v14 }
 0x124   :  { %2885 = vmatpush3.msra.mxu1 %v3027_v8  ;;  %2836 = vmatpush3.msra.mxu0 %v3049_v17 }
 0x125   :  { %2886 = vmatprep.subr.mxu1 %v2978_v14  ;;  %2837 = vmatprep.subr.mxu0 %v2978_v14 }
 0x126   :  { %2887 = vmatpush3.msra.mxu1 %v3029_v9  ;;  %2838 = vmatpush3.msra.mxu0 %v3051_v18 }
 0x127   :  { %2888 = vmatprep.subr.mxu1 %v2978_v14  ;;  %2839 = vmatprep.subr.mxu0 %v2978_v14 }
 0x128   :  { %2889 = vmatpush3.msra.mxu1 %v3031_v10  ;;  %2840 = vmatpush3.msra.mxu0 %v3090_v30 }
 0x129   :  { %2841 = vmatprep.mubr.msk.f32.mxu0 %vm2979_vm0, %v2978_v14  ;;  %2890 = vmatprep.subr.mxu1 %v2978_v14 }
 0x12a   :  { %2842 = vmatmul.mubr.f32.vlgmr.msra.gmra.mxu0 %v1758_v42  ;;  %2863 = vmatprep.subr.mxu0 %v2978_v14 }
 0x12b   :  { %2891 = vmatpush3.msra.mxu1 %v3047_v16  ;;  %2864 = vmatpush3.msra.mxu0 %v3044_v15 }
 0x12c   :  { %2892 = vmatprep.subr.mxu1 %v2978_v14  ;;  %2865 = vmatprep.subr.mxu0 %v2978_v14 }
 0x12d   :  { %2893 = vmatpush3.msra.mxu1 %v3049_v17  ;;  %2866 = vmatpush3.msra.mxu0 %v3057_v20 }
 0x12e   :  { %2894 = vmatprep.subr.mxu1 %v2978_v14  ;;  %2867 = vmatprep.subr.mxu0 %v2978_v14 }
 0x12f   :  { %2895 = vmatpush3.msra.mxu1 %v3051_v18  ;;  %2868 = vmatpush3.msra.mxu0 %v3060_v21 }
 0x130   :  { %2896 = vmatprep.subr.mxu1 %v2978_v14  ;;  %2869 = vmatprep.subr.mxu0 %v2978_v14 }
 0x131   :  { %2897 = vmatpush3.msra.mxu1 %v3090_v30  ;;  %2898 = vmatprep.mubr.msk.f32.mxu1 %vm2979_vm0, %v2978_v14 }
 0x132   :  { %2870 = vmatpush3.msra.mxu0 %v3063_v22  ;;  %2899 = vmatmul.mubr.f32.vlgmr.msra.gmra.mxu1 %v1756_v40 }
 0x133   :  { %2920 = vmatprep.subr.mxu1 %v2978_v14  ;;  %2871 = vmatprep.subr.mxu0 %v2978_v14 }
 0x134   :  { %2921 = vmatpush3.msra.mxu1 %v3014_v4  ;;  %2872 = vmatpush3.msra.mxu0 %v3072_v24 }
 0x135   :  { %2922 = vmatprep.subr.mxu1 %v2978_v14  ;;  %2873 = vmatprep.subr.mxu0 %v2978_v14 }
 0x136   :  { %2923 = vmatpush3.msra.mxu1 %v3027_v8  ;;  %2874 = vmatpush3.msra.mxu0 %v3076_v25 }
 0x137   :  { %2924 = vmatprep.subr.mxu1 %v2978_v14  ;;  %2875 = vmatprep.subr.mxu0 %v2978_v14 }
 0x138   :  { %2925 = vmatpush3.msra.mxu1 %v3029_v9  ;;  %2876 = vmatpush3.msra.mxu0 %v3100_v33  ;;  %v3628_v9 = vld [vmem:[%s3650_s2] ss:$0 sm:$0xff]  ;;  %s2982_s2 = smov 32  }
 0x139   :  { %2926 = vmatprep.subr.mxu1 %v2978_v14  ;;  %2877 = vmatprep.subr.mxu0 %v2978_v14 }
 0x13a   :  { %2927 = vmatpush3.msra.mxu1 %v3031_v10  ;;  %2878 = vmatpush3.msra.mxu0 %v3116_v39 }
 0x13b   :  { %2879 = vmatprep.mubr.msk.f32.mxu0 %vm2979_vm0, %v2978_v14  ;;  %2928 = vmatprep.subr.mxu1 %v2978_v14 }
 0x13c   :  { %2880 = vmatmul.mubr.f32.vlgmr.msra.gmra.mxu0 %v3527_v37  ;;  %2901 = vmatprep.subr.mxu0 %v2978_v14 }
 0x13d   :  { %2929 = vmatpush3.msra.mxu1 %v3047_v16  ;;  %2902 = vmatpush3.msra.mxu0 %v3069_v23 }
 0x13e   :  { %2930 = vmatprep.subr.mxu1 %v2978_v14  ;;  %2903 = vmatprep.subr.mxu0 %v2978_v14 }
 0x13f   :  { %2931 = vmatpush3.msra.mxu1 %v3049_v17  ;;  %2904 = vmatpush3.msra.mxu0 %v3081_v27 }
 0x140   :  { %2932 = vmatprep.subr.mxu1 %v2978_v14  ;;  %2905 = vmatprep.subr.mxu0 %v2978_v14  ;;  %v233_v4 = vpop.f32.mrf.mxu1 }
 0x141   :  { %2933 = vmatpush3.msra.mxu1 %v3051_v18  ;;  %2906 = vmatpush3.msra.mxu0 %v3084_v28 }
 0x142   :  { %2934 = vmatprep.subr.mxu1 %v2978_v14  ;;  %2907 = vmatprep.subr.mxu0 %v2978_v14  ;;  %v2520_v8 = vpop.f32.mrf.mxu1 }
 0x143   :  { %2935 = vmatpush3.msra.mxu1 %v3090_v30  ;;  %2936 = vmatprep.mubr.msk.f32.mxu1 %vm2979_vm0, %v2978_v14 }
 0x144   :  { %2908 = vmatpush3.msra.mxu0 %v3087_v29  ;;  %2937 = vmatmul.mubr.msk.f32.vlgmr.msra.gmra.mxu1 %vm39_vm1, %v3509_v35 }
 0x145   :  { %2909 = vmatprep.subr.mxu0 %v2978_v14  ;;  %2917 = vmatprep.mubr.msk.f32.mxu0 %vm2979_vm0, %v2978_v14 }
 0x146   :  { %2910 = vmatpush3.msra.mxu0 %v3096_v32 }
 0x147   :  { %2911 = vmatprep.subr.mxu0 %v2978_v14 }
 0x148   :  { %2912 = vmatpush3.msra.mxu0 %v3112_v38 }
 0x149   :  { %2913 = vmatprep.subr.mxu0 %v2978_v14  ;;  %v122_v10 = vpop.f32.mrf.mxu0 }
 0x14a   :  { %2914 = vmatpush3.msra.mxu0 %v3127_v43  ;;  %v123_v15 = vadd.f32 %v3628_v9, %v122_v10 }
 0x14b   :  { %2915 = vmatprep.subr.mxu0 %v2978_v14  ;;  %v2501_v16 = vpop.f32.mrf.mxu0 }
 0x14c   :  { %2916 = vmatpush3.msra.mxu0 %v3138_v46  ;;  %v234_v17 = vadd.f32 %v233_v4, %v123_v15 }
 0x14d   :  { %2918 = vmatmul.mubr.msk.f32.vlgmr.msra.gmra.mxu0 %vm39_vm1, %v3509_v35 }
 0x150   :  { %v402_v18 = vpop.f32.mrf.mxu1 }
 0x152   :  { %v2558_v20 = vpop.f32.mrf.mxu1 }
 0x15a   :  { %v321_v21 = vpop.f32.mrf.mxu0 }
 0x15b   :  { %v322_v22 = vadd.f32 %v321_v21, %v234_v17 }
 0x15c   :  { %v2539_v23 = vpop.f32.mrf.mxu0 }
 0x15d   :  { %v403_v24 = vadd.f32 %v402_v18, %v322_v22 }
 0x162   :  { %v576_v25 = vpop.f32.mrf.mxu1 }
 0x164   :  { %v2596_v27 = vpop.f32.mrf.mxu1 }
 0x16c   :  { %v497_v28 = vpop.f32.mrf.mxu0 }
 0x16d   :  { %v498_v29 = vadd.f32 %v497_v28, %v403_v24 }
 0x16e   :  { %v2577_v30 = vpop.f32.mrf.mxu0 }
 0x16f   :  { %v3638_v32 = vadd.f32 %v576_v25, %v498_v29 }
 0x174   :  { %v779_v14 = vpop.f32.mrf.mxu1 }
 0x176   :  { %v2634_v33 = vpop.f32.mrf.mxu1 }
 0x17e   :  { %v668_v38 = vpop.f32.mrf.mxu0 }
 0x17f   :  { %v669_v47 = vadd.f32 %v3628_v9, %v668_v38 }
 0x180   :  { %v2615_v39 = vpop.f32.mrf.mxu0 }
 0x181   :  { %v780_v50 = vadd.f32 %v779_v14, %v669_v47 }
 0x186   :  { %v948_v43 = vpop.f32.mrf.mxu1 }
 0x188   :  { %v2672_v44 = vpop.f32.mrf.mxu1 }
 0x190   :  { %v867_v45 = vpop.f32.mrf.mxu0 }
 0x191   :  { %v868_v51 = vadd.f32 %v867_v45, %v780_v50 }
 0x192   :  { %v2653_v46 = vpop.f32.mrf.mxu0 }
 0x193   :  { %v949_v52 = vadd.f32 %v948_v43, %v868_v51 }
 0x198   :  { %v1122_v48 = vpop.f32.mrf.mxu1 }
 0x19a   :  { %v2710_v49 = vpop.f32.mrf.mxu1 }
 0x1a2   :  { %v1043_v53 = vpop.f32.mrf.mxu0 }
 0x1a3   :  { %v1044_v54 = vadd.f32 %v1043_v53, %v949_v52 }
 0x1a4   :  { %v2691_v55 = vpop.f32.mrf.mxu0 }
 0x1a5   :  { %v1123_v56 = vadd.f32 %v1122_v48, %v1044_v54 }
 0x1a7   :  { %2219 = vrot.lane.b32.xlu1 %v1123_v56, %s2982_s2 }
 0x1aa   :  { %v1325_v57 = vpop.f32.mrf.mxu1 }
 0x1ac   :  { %v2748_v58 = vpop.f32.mrf.mxu1 }
 0x1b4   :  { %v1214_v59 = vpop.f32.mrf.mxu0 }
 0x1b5   :  { %v1215_v1 = vadd.f32 %v3628_v9, %v1214_v59 }
 0x1b6   :  { %v2729_v60 = vpop.f32.mrf.mxu0 }
 0x1b7   :  { %v1326_v5 = vadd.f32 %v1325_v57, %v1215_v1 }
 0x1bc   :  { %v1494_v61 = vpop.f32.mrf.mxu1 }
 0x1be   :  { %v2786_v62 = vpop.f32.mrf.mxu1 }
 0x1c6   :  { %v1413_v63 = vpop.f32.mrf.mxu0 }
 0x1c7   :  { %v1414_v6 = vadd.f32 %v1413_v63, %v1326_v5 }
 0x1c8   :  { %v2767_v0 = vpop.f32.mrf.mxu0 }
 0x1c9   :  { %v1495_v7 = vadd.f32 %v1494_v61, %v1414_v6 }
 0x1ce   :  { %v1668_v2 = vpop.f32.mrf.mxu1 }
 0x1d0   :  { %v2824_v3 = vpop.f32.mrf.mxu1 }
 0x1d8   :  { %v1589_v11 = vpop.f32.mrf.mxu0 }
 0x1d9   :  { %v1590_v12 = vadd.f32 %v1589_v11, %v1495_v7 }
 0x1da   :  { %v2805_v13 = vpop.f32.mrf.mxu0 }
 0x1db   :  { %v1669_v19 = vadd.f32 %v1668_v2, %v1590_v12 }
 0x1dd   :  { %2223 = vrot.lane.b32.xlu0 %v1669_v19, %s2983_s30 }
 0x1e0   :  { %v1871_v26 = vpop.f32.mrf.mxu1 }
 0x1e2   :  { %v2862_v31 = vpop.f32.mrf.mxu1 }
 0x1ea   :  { %v1760_v34 = vpop.f32.mrf.mxu0 }
 0x1eb   :  { %v1761_v42 = vadd.f32 %v3628_v9, %v1760_v34 }
 0x1ec   :  { %v2843_v35 = vpop.f32.mrf.mxu0 }
 0x1ed   :  { %v1872_v8 = vadd.f32 %v1871_v26, %v1761_v42 }
 0x1f2   :  { %v2040_v36 = vpop.f32.mrf.mxu1 }
 0x1f4   :  { %v2900_v37 = vpop.f32.mrf.mxu1 }
 0x1fc   :  { %v1959_v40 = vpop.f32.mrf.mxu0 }
 0x1fd   :  { %v1960_v15 = vadd.f32 %v1959_v40, %v1872_v8 }
 0x1fe   :  { %v2881_v41 = vpop.f32.mrf.mxu0 }
 0x1ff   :  { %v2041_v16 = vadd.f32 %v2040_v36, %v1960_v15 }
 0x204   :  { %v2214_v4 = vpop.f32.mrf.mxu1 }
 0x206   :  { %v2938_v10 = vpop.f32.mrf.mxu1 }
 0x20d   :  { %v2135_v17 = vpop.f32.mrf.mxu0 }
 0x20e   :  { %v2136_v18 = vadd.f32 %v2135_v17, %v2041_v16 }
 0x20f   :  { %v2919_v20 = vpop.f32.mrf.mxu0 }
 0x210   :  { %v2215_v21 = vadd.f32 %v2214_v4, %v2136_v18 }
 0x212   :  { %2227 = vrot.lane.b32.xlu1 %v2215_v21, %s2984_s4 }
 0x219   :  { %v2220_v22 = vpop.permute.xlu1 %2219 }
 0x21a   :  { %v2231_v24 = vsel %vm2230_vm6, %v3638_v32, %v2220_v22 }
 0x24f   :  { %v2224_v23 = vpop.permute.xlu0 %2223 }
 0x250   :  { %v2232_v9 = vsel %vm39_vm1, %v2231_v24, %v2224_v23 }
 0x284   :  { %v2228_v25 = vpop.permute.xlu1 %2227 }
 0x285   :  { %v2234_v27 = vsel %vm2233_vm7, %v2232_v9, %v2228_v25 }
 0x286   :  { %2235 = vst [vmem:[#allocation2] sm:$0xff] %v2234_v27 }
 0x287   :  { %2965 = shalt.err (!%p2962_p4)
}
 0x288   :  { %2245 = dma.vmem_to_hbm [thread:$0]  %s2243_s6, 128, %s3651_s3, [#allocation3]  }
 0x289   :  { %2974 = dma.done.wait [#allocation3], 128  }
 0x28a   :  { %2975 = vsyncadd [#allocation3], 4294967168 }
 0x28b   :  { %2249 = vsyncpa [#allocation3], 1 }

</bundles_post_ra>
